<compile_context>
chip_gen: v7x
topology: tpu7x:2x2x1
jax: 0.10.0
libtpu: 0.0.40
codegen_flags: <defaults>
</compile_context>

<pallas_src>
import functools

import jax
import jax.numpy as jnp
import numpy as np
from jax.experimental import pallas as pl
from jax.experimental.pallas import tpu as pltpu


def _conv_kernel(xph_ref, w_ref, b_ref, out_ref, *, K, stride, TH, Wout, Cin):
    """One (batch, row-tile) step of the convolution as a single im2col matmul.

    xph_ref: (1, s, s, Hph, Wph, Cin)  phase-decomposed zero-padded input
                                       (whole image, resident across row tiles)
    w_ref  : (K*K*Cin, Cout)           weights, contraction-major
    b_ref  : (1, Cout)                 bias
    out_ref: (1, TH, Wout, Cout)       NHWC output tile (lane axis = Cout)
    """
    h0 = pl.multiple_of(pl.program_id(1) * TH, TH)

    # im2col in VMEM: K*K contiguous shifted slabs, concatenated on the
    # contraction (lane) axis -> (TH*Wout, K*K*Cin).
    cols = []
    for kh in range(K):
        p, dr = kh % stride, kh // stride
        for kw in range(K):
            q, dc = kw % stride, kw // stride
            slab = xph_ref[0, p, q, pl.ds(h0 + dr, TH), pl.ds(dc, Wout), :]
            cols.append(slab.reshape(TH * Wout, Cin))
    patch = jnp.concatenate(cols, axis=1)

    # One big MXU matmul with K*K*Cin contraction; f32 accumulation.
    acc = jnp.dot(patch, w_ref[...], preferred_element_type=jnp.float32)
    acc = acc + b_ref[...].astype(jnp.float32)          # bias epilogue, once
    out_ref[...] = acc.reshape(out_ref.shape).astype(out_ref.dtype)


def _largest_divisor_leq(n, cap):
    cap = max(1, min(n, cap))
    for d in range(cap, 0, -1):
        if n % d == 0:
            return d
    return 1


def custom_conv2d(x, weight, bias, *, stride=1, padding=0, row_tile_target=512):
    """Equivalent of CustomConv2d.forward (InjectFault=False path)."""
    N, Cin, H, W = x.shape
    Cout, Cin_w, K, K2 = weight.shape
    assert Cin == Cin_w and K == K2
    s = stride

    Hout = (H - K + 2 * padding) // s + 1
    Wout = (W - K + 2 * padding) // s + 1

    # --- XLA-side layout plumbing (keeps every in-kernel load contiguous) ---
    xp = jnp.pad(x, ((0, 0), (0, 0), (padding, padding), (padding, padding)))
    xp = jnp.transpose(xp, (0, 2, 3, 1))                 # (N, Hp, Wp, Cin)
    Hp, Wp = xp.shape[1], xp.shape[2]

    # De-interleave stride phases: phase(p,q)[i,j] = xp[i*s+p, j*s+q], so a tap
    # (kh,kw) becomes a stride-1 slice of phase (kh%s, kw%s) at (kh//s, kw//s).
    dK = (K - 1) // s
    Hph, Wph = Hout + dK, Wout + dK
    Hp_ext, Wp_ext = max(Hph * s, Hp), max(Wph * s, Wp)
    xp = jnp.pad(xp, ((0, 0), (0, Hp_ext - Hp), (0, Wp_ext - Wp), (0, 0)))
    rows = []
    for p in range(s):
        cols_ph = [xp[:, p:p + Hph * s:s, q:q + Wph * s:s, :] for q in range(s)]
        rows.append(jnp.stack(cols_ph, axis=1))
    xph = jnp.stack(rows, axis=1)                        # (N, s, s, Hph, Wph, Cin)

    # Weights (Cout, Cin, K, K) -> (K*K*Cin, Cout); bias -> (1, Cout).
    w2 = jnp.transpose(weight, (2, 3, 1, 0)).reshape(K * K * Cin, Cout)
    w2 = w2.astype(x.dtype)
    b2 = bias.reshape(1, Cout).astype(jnp.float32)

    # Row tile: a divisor of Hout targeting ~row_tile_target im2col rows.
    TH = _largest_divisor_leq(Hout, max(1, row_tile_target // max(Wout, 1)))
    n_ht = Hout // TH

    kernel = functools.partial(_conv_kernel, K=K, stride=s, TH=TH,
                               Wout=Wout, Cin=Cin)

    itemsize = jnp.dtype(x.dtype).itemsize
    cost = pl.CostEstimate(
        flops=2 * N * Hout * Wout * Cout * Cin * K * K,
        transcendentals=0,
        bytes_accessed=int((xph.size + w2.size) * itemsize + b2.size * 4
                           + N * Hout * Wout * Cout * itemsize),
    )

    out_nhwc = pl.pallas_call(
        kernel,
        out_shape=jax.ShapeDtypeStruct((N, Hout, Wout, Cout), x.dtype),
        grid=(N, n_ht),
        in_specs=[
            # Whole phase-decomposed image per batch element; block index is
            # constant along the row-tile axis so it stays resident in VMEM.
            pl.BlockSpec((1, s, s, Hph, Wph, Cin),
                         lambda n, h: (n, 0, 0, 0, 0, 0)),
            pl.BlockSpec((K * K * Cin, Cout), lambda n, h: (0, 0)),
            pl.BlockSpec((1, Cout), lambda n, h: (0, 0)),
        ],
        out_specs=pl.BlockSpec((1, TH, Wout, Cout), lambda n, h: (n, h, 0, 0)),
        compiler_params=pltpu.CompilerParams(
            dimension_semantics=("parallel", "parallel"),
            vmem_limit_bytes=32 * 1024 * 1024),
        cost_estimate=cost,
    )(xph, w2, b2)

    return jnp.transpose(out_nhwc, (0, 3, 1, 2))         # back to NCHW


if __name__ == "__main__":
    key = jax.random.PRNGKey(0)
    kx, kw_, kb = jax.random.split(key, 3)

    N, Cin, H, W = 2, 4, 16, 16
    Cout, K = 8, 3

    x = jax.random.normal(kx, (N, Cin, H, W), dtype=jnp.float32)
    weight = jax.random.normal(kw_, (Cout, Cin, K, K), dtype=jnp.float32)
    bias = jax.random.normal(kb, (Cout,), dtype=jnp.float32)

    def reference(x, w, b, stride, padding):
        return jax.lax.conv_general_dilated(
            x, w, window_strides=(stride, stride),
            padding=[(padding, padding), (padding, padding)],
            dimension_numbers=("NCHW", "OIHW", "NCHW"),
            precision=jax.lax.Precision.HIGHEST,
        ) + b.reshape(1, -1, 1, 1)

    # Case 1: stride=1, padding=1 — small row_tile_target forces several
    # row tiles so the (N, Hout//TH) grid path is exercised.
    out1 = custom_conv2d(x, weight, bias, stride=1, padding=1,
                         row_tile_target=64)
    out1 = jax.block_until_ready(out1)
    np.testing.assert_allclose(np.asarray(out1),
                               np.asarray(reference(x, weight, bias, 1, 1)),
                               rtol=1e-4, atol=1e-4)

    # Case 2: stride=2, padding=1 — validates the phase-de-interleaved path.
    out2 = custom_conv2d(x, weight, bias, stride=2, padding=1)
    out2 = jax.block_until_ready(out2)
    np.testing.assert_allclose(np.asarray(out2),
                               np.asarray(reference(x, weight, bias, 2, 1)),
                               rtol=1e-4, atol=1e-4)

    print("KERNEL_OK")
</pallas_src>

<mosaic_0001>
module attributes {stable_mosaic.version = 11 : i64} {
  func.func @_conv_kernel(%arg0: i32, %arg1: i32, %arg2: memref<1x1x1x18x18x4xf32, #tpu.memory_space<vmem>>, %arg3: memref<36x8xf32, #tpu.memory_space<vmem>>, %arg4: memref<1x8xf32, #tpu.memory_space<vmem>>, %arg5: memref<1x4x16x8xf32, #tpu.memory_space<vmem>>) attributes {dimension_semantics = [#tpu.dimension_semantics<parallel>, #tpu.dimension_semantics<parallel>], iteration_bounds = array<i64: 2, 4>, scalar_prefetch = 0 : i64, scratch_operands = 0 : i64, tpu.core_type = #tpu.core_type<tc>, window_params = [{transform_indices = @transform_0, window_bounds = array<i64: 1, 1, 1, 18, 18, 4>}, {pipeline_mode = #tpu.pipeline_mode<synchronous>, transform_indices = @transform_1, window_bounds = array<i64: 36, 8>}, {pipeline_mode = #tpu.pipeline_mode<synchronous>, transform_indices = @transform_2, window_bounds = array<i64: 1, 8>}, {transform_indices = @transform_3, window_bounds = array<i64: 1, 4, 16, 8>}]} {
    %c4_i32 = arith.constant 4 : i32
    %0 = arith.muli %arg1, %c4_i32 : i32
    %1 = tpu.assume_multiple %0, 4 : i32
    %c0_i32 = arith.constant 0 : i32
    %2 = arith.addi %1, %c0_i32 : i32
    %c0 = arith.constant 0 : index
    %c0_0 = arith.constant 0 : index
    %c0_1 = arith.constant 0 : index
    %3 = arith.index_cast %2 : i32 to index
    %c0_2 = arith.constant 0 : index
    %c0_3 = arith.constant 0 : index
    %4 = vector.load %arg2[%c0, %c0_0, %c0_1, %3, %c0_2, %c0_3] : memref<1x1x1x18x18x4xf32, #tpu.memory_space<vmem>>, vector<1x1x1x4x16x4xf32>
    %5 = vector.shape_cast %4 : vector<1x1x1x4x16x4xf32> to vector<4x16x4xf32>
    %6 = vector.shape_cast %5 : vector<4x16x4xf32> to vector<64x4xf32>
    %c0_i32_4 = arith.constant 0 : i32
    %7 = arith.addi %1, %c0_i32_4 : i32
    %c0_5 = arith.constant 0 : index
    %c0_6 = arith.constant 0 : index
    %c0_7 = arith.constant 0 : index
    %8 = arith.index_cast %7 : i32 to index
    %c1 = arith.constant 1 : index
    %c0_8 = arith.constant 0 : index
    %9 = vector.load %arg2[%c0_5, %c0_6, %c0_7, %8, %c1, %c0_8] : memref<1x1x1x18x18x4xf32, #tpu.memory_space<vmem>>, vector<1x1x1x4x16x4xf32>
    %10 = vector.shape_cast %9 : vector<1x1x1x4x16x4xf32> to vector<4x16x4xf32>
    %11 = vector.shape_cast %10 : vector<4x16x4xf32> to vector<64x4xf32>
    %c0_i32_9 = arith.constant 0 : i32
    %12 = arith.addi %1, %c0_i32_9 : i32
    %c0_10 = arith.constant 0 : index
    %c0_11 = arith.constant 0 : index
    %c0_12 = arith.constant 0 : index
    %13 = arith.index_cast %12 : i32 to index
    %c2 = arith.constant 2 : index
    %c0_13 = arith.constant 0 : index
    %14 = vector.load %arg2[%c0_10, %c0_11, %c0_12, %13, %c2, %c0_13] : memref<1x1x1x18x18x4xf32, #tpu.memory_space<vmem>>, vector<1x1x1x4x16x4xf32>
    %15 = vector.shape_cast %14 : vector<1x1x1x4x16x4xf32> to vector<4x16x4xf32>
    %16 = vector.shape_cast %15 : vector<4x16x4xf32> to vector<64x4xf32>
    %c1_i32 = arith.constant 1 : i32
    %17 = arith.addi %1, %c1_i32 : i32
    %c0_14 = arith.constant 0 : index
    %c0_15 = arith.constant 0 : index
    %c0_16 = arith.constant 0 : index
    %18 = arith.index_cast %17 : i32 to index
    %c0_17 = arith.constant 0 : index
    %c0_18 = arith.constant 0 : index
    %19 = vector.load %arg2[%c0_14, %c0_15, %c0_16, %18, %c0_17, %c0_18] : memref<1x1x1x18x18x4xf32, #tpu.memory_space<vmem>>, vector<1x1x1x4x16x4xf32>
    %20 = vector.shape_cast %19 : vector<1x1x1x4x16x4xf32> to vector<4x16x4xf32>
    %21 = vector.shape_cast %20 : vector<4x16x4xf32> to vector<64x4xf32>
    %c1_i32_19 = arith.constant 1 : i32
    %22 = arith.addi %1, %c1_i32_19 : i32
    %c0_20 = arith.constant 0 : index
    %c0_21 = arith.constant 0 : index
    %c0_22 = arith.constant 0 : index
    %23 = arith.index_cast %22 : i32 to index
    %c1_23 = arith.constant 1 : index
    %c0_24 = arith.constant 0 : index
    %24 = vector.load %arg2[%c0_20, %c0_21, %c0_22, %23, %c1_23, %c0_24] : memref<1x1x1x18x18x4xf32, #tpu.memory_space<vmem>>, vector<1x1x1x4x16x4xf32>
    %25 = vector.shape_cast %24 : vector<1x1x1x4x16x4xf32> to vector<4x16x4xf32>
    %26 = vector.shape_cast %25 : vector<4x16x4xf32> to vector<64x4xf32>
    %c1_i32_25 = arith.constant 1 : i32
    %27 = arith.addi %1, %c1_i32_25 : i32
    %c0_26 = arith.constant 0 : index
    %c0_27 = arith.constant 0 : index
    %c0_28 = arith.constant 0 : index
    %28 = arith.index_cast %27 : i32 to index
    %c2_29 = arith.constant 2 : index
    %c0_30 = arith.constant 0 : index
    %29 = vector.load %arg2[%c0_26, %c0_27, %c0_28, %28, %c2_29, %c0_30] : memref<1x1x1x18x18x4xf32, #tpu.memory_space<vmem>>, vector<1x1x1x4x16x4xf32>
    %30 = vector.shape_cast %29 : vector<1x1x1x4x16x4xf32> to vector<4x16x4xf32>
    %31 = vector.shape_cast %30 : vector<4x16x4xf32> to vector<64x4xf32>
    %c2_i32 = arith.constant 2 : i32
    %32 = arith.addi %1, %c2_i32 : i32
    %c0_31 = arith.constant 0 : index
    %c0_32 = arith.constant 0 : index
    %c0_33 = arith.constant 0 : index
    %33 = arith.index_cast %32 : i32 to index
    %c0_34 = arith.constant 0 : index
    %c0_35 = arith.constant 0 : index
    %34 = vector.load %arg2[%c0_31, %c0_32, %c0_33, %33, %c0_34, %c0_35] : memref<1x1x1x18x18x4xf32, #tpu.memory_space<vmem>>, vector<1x1x1x4x16x4xf32>
    %35 = vector.shape_cast %34 : vector<1x1x1x4x16x4xf32> to vector<4x16x4xf32>
    %36 = vector.shape_cast %35 : vector<4x16x4xf32> to vector<64x4xf32>
    %c2_i32_36 = arith.constant 2 : i32
    %37 = arith.addi %1, %c2_i32_36 : i32
    %c0_37 = arith.constant 0 : index
    %c0_38 = arith.constant 0 : index
    %c0_39 = arith.constant 0 : index
    %38 = arith.index_cast %37 : i32 to index
    %c1_40 = arith.constant 1 : index
    %c0_41 = arith.constant 0 : index
    %39 = vector.load %arg2[%c0_37, %c0_38, %c0_39, %38, %c1_40, %c0_41] : memref<1x1x1x18x18x4xf32, #tpu.memory_space<vmem>>, vector<1x1x1x4x16x4xf32>
    %40 = vector.shape_cast %39 : vector<1x1x1x4x16x4xf32> to vector<4x16x4xf32>
    %41 = vector.shape_cast %40 : vector<4x16x4xf32> to vector<64x4xf32>
    %c2_i32_42 = arith.constant 2 : i32
    %42 = arith.addi %1, %c2_i32_42 : i32
    %c0_43 = arith.constant 0 : index
    %c0_44 = arith.constant 0 : index
    %c0_45 = arith.constant 0 : index
    %43 = arith.index_cast %42 : i32 to index
    %c2_46 = arith.constant 2 : index
    %c0_47 = arith.constant 0 : index
    %44 = vector.load %arg2[%c0_43, %c0_44, %c0_45, %43, %c2_46, %c0_47] : memref<1x1x1x18x18x4xf32, #tpu.memory_space<vmem>>, vector<1x1x1x4x16x4xf32>
    %45 = vector.shape_cast %44 : vector<1x1x1x4x16x4xf32> to vector<4x16x4xf32>
    %46 = vector.shape_cast %45 : vector<4x16x4xf32> to vector<64x4xf32>
    %47 = tpu.concatenate %6, %11, %16, %21, %26, %31, %36, %41, %46 in 1 : vector<64x4xf32>, vector<64x4xf32>, vector<64x4xf32>, vector<64x4xf32>, vector<64x4xf32>, vector<64x4xf32>, vector<64x4xf32>, vector<64x4xf32>, vector<64x4xf32> -> vector<64x36xf32>
    %c0_48 = arith.constant 0 : index
    %c0_49 = arith.constant 0 : index
    %48 = vector.load %arg3[%c0_48, %c0_49] : memref<36x8xf32, #tpu.memory_space<vmem>>, vector<36x8xf32>
    %cst = arith.constant dense<0.000000e+00> : vector<64x8xf32>
    %49 = tpu.matmul %47, %48, %cst {dimension_numbers = #tpu.dot_dimension_numbers<[1], [0], [0], [1], [0, 0, 1, 1], [], []>} : vector<64x36xf32>, vector<36x8xf32>, vector<64x8xf32> -> vector<64x8xf32>
    %c0_50 = arith.constant 0 : index
    %c0_51 = arith.constant 0 : index
    %50 = vector.load %arg4[%c0_50, %c0_51] : memref<1x8xf32, #tpu.memory_space<vmem>>, vector<1x8xf32>
    %51 = vector.broadcast %50 : vector<1x8xf32> to vector<64x8xf32>
    %52 = arith.addf %49, %51 : vector<64x8xf32>
    %53 = vector.shape_cast %52 : vector<64x8xf32> to vector<1x4x16x8xf32>
    %c0_52 = arith.constant 0 : index
    %c0_53 = arith.constant 0 : index
    %c0_54 = arith.constant 0 : index
    %c0_55 = arith.constant 0 : index
    %54 = vector.load %arg5[%c0_52, %c0_53, %c0_54, %c0_55] : memref<1x4x16x8xf32, #tpu.memory_space<vmem>>, vector<1x4x16x8xf32>
    tpu.vector_store %arg5[%c0_52, %c0_53, %c0_54, %c0_55], %53 {strides = array<i32>} : memref<1x4x16x8xf32, #tpu.memory_space<vmem>>, vector<1x4x16x8xf32>,
    return
  }
  func.func @transform_0(%arg0: i32, %arg1: i32) -> (i32, i32, i32, i32, i32, i32) {
    %c0_i32 = arith.constant 0 : i32
    %c0_i32_0 = arith.constant 0 : i32
    %c0_i32_1 = arith.constant 0 : i32
    %c0_i32_2 = arith.constant 0 : i32
    %c0_i32_3 = arith.constant 0 : i32
    %c0_i32_4 = arith.constant 0 : i32
    return %arg0, %c0_i32, %c0_i32_0, %c0_i32_1, %c0_i32_2, %c0_i32_3 : i32, i32, i32, i32, i32, i32
  }
  func.func @transform_1(%arg0: i32, %arg1: i32) -> (i32, i32) {
    %c0_i32 = arith.constant 0 : i32
    %c0_i32_0 = arith.constant 0 : i32
    %c0_i32_1 = arith.constant 0 : i32
    return %c0_i32, %c0_i32_0 : i32, i32
  }
  func.func @transform_2(%arg0: i32, %arg1: i32) -> (i32, i32) {
    %c0_i32 = arith.constant 0 : i32
    %c0_i32_0 = arith.constant 0 : i32
    %c0_i32_1 = arith.constant 0 : i32
    return %c0_i32, %c0_i32_0 : i32, i32
  }
  func.func @transform_3(%arg0: i32, %arg1: i32) -> (i32, i32, i32, i32) {
    %c0_i32 = arith.constant 0 : i32
    %c0_i32_0 = arith.constant 0 : i32
    %c0_i32_1 = arith.constant 0 : i32
    return %arg0, %arg1, %c0_i32, %c0_i32_0 : i32, i32, i32, i32
  }
}

</mosaic_0001>

<bundles_post_ra>
// kernel: tpu_custom_call.1
= control target key start
LH: loop header
LB: loop body
LE: loop exit
PB: predicated region body
PF: predicated region fallthrough
CT: control target
= control target key end

     0   :  { %s1101_s12 = smov 0   ;;  %s1103_s13 = smov 0   ;;  %s1458_s0 = inlined_call_operand.vmem [shape: f32[2,1,1,18,18,4], index: 0, kind: input, shape index: {}]   ;;  %s1459_s1 = inlined_call_operand.vmem [shape: f32[36,8], index: 1, kind: input, shape index: {}]   ;;  %s1460_s2 = inlined_call_operand.vmem [shape: f32[1,8], index: 2, kind: input, shape index: {}]   ;;  %s1461_s3 = inlined_call_operand.vmem [shape: f32[2,16,16,8], index: 3, kind: output, shape index: {}]  }
   0x1   :  { %s1105_s14 = smov 0   ;;  %s1107_s15 = smov 0  }
   0x2   :  { %s1109_s16 = smov 0  }
   0x3 LB: > { %s22_s17 = sadd.s32 1, %s1063_s14  ;;  %s25_s18 = sadd.s32 1, %s1067_s15  ;;  %s1071_s16 = sphi %s1109_s16, %s13_s16   ;;  %s1067_s15 = sphi %s1107_s15, %s1465_s15   ;;  %s1063_s14 = sphi %s1105_s14, %s1464_s14   ;;  %s1059_s13 = sphi %s1103_s13, %s1463_s13   ;;  %s1055_s12 = sphi %s1101_s12, %s1462_s12  }
   0x4   : > { %p23_p0 = scmp.ge.s32.totalorder %s22_s17, 4  ;;  %p863_p1 = scmp.ge.s32.totalorder %s1071_s16, 1 }
   0x5   : > { %p151_p2 = scmp.lt.s32.totalorder %s1071_s16, 9 }
   0x6   : > { %s1467_s17 = smov (%p23_p0, %s22_s17), 0  ;;  %s1469_s18 = smov (!%p23_p0, %s25_s18), %s1067_s15 }
   0x7   : > { %p152_p3 = pnand %p863_p1, %p151_p2  ;;  %p27_p4 = scmp.ge.s32.totalorder %s1469_s18, 2 }
   0x8   : > { %p180_p5 = scmp.lt.s32.totalorder (!%p152_p3), %s1059_s13, 1  ;;  %s870_s19 = smul.u32 (!%p152_p3), 96, %s1055_s12  ;;  %v605_v25 = vld [vmem:[%s1459_s1] sm:$0xff] (!%p152_p3)  ;;  %v606_v26 = vld [vmem:[%s1459_s1 + $0x8] sm:$0xff] (!%p152_p3)  ;;  %v607_v28 = vld [vmem:[%s1459_s1 + $0x10] sm:$0xff] (!%p152_p3)  ;;  %vm642_vm0 = vcmask (!%p152_p3), 1043456  }
   0x9   : > { %s1471_s18 = smov (%p27_p4, %s1469_s18), 0  ;;  %155 = sbr.rel (%p152_p3) target bundleno = 478 (0x1de), region = 32 }
   0xa   : > { %s1073_s25 = smov (!%p152_p3), 4   ;;  %s1074_s26 = smov (!%p152_p3), 8   ;;  %v970_v27 = vpack.c.bf16 (!%p152_p3), %v606_v26, %v605_v25  ;;  %v608_v29 = vld [vmem:[%s1459_s1 + $0x18] sm:$0xff] (!%p152_p3)  ;;  %v609_v32 = vld [vmem:[%s1459_s1 + $0x20] sm:$0xf] (!%p152_p3)  ;;  %vm533_vm1 = vcmask (!%p152_p3), 31744  }
   0xb   : > { %s1075_s27 = smov (!%p152_p3), 12   ;;  %s1076_s28 = smov (!%p152_p3), 16   ;;  %v974_v30 = vpack.c.bf16 (!%p152_p3), %v608_v29, %v607_v28  ;;  %vm542_vm2 = vcmask (!%p152_p3), 64512   ;;  %vm551_vm3 = vcmask (!%p152_p3), 97280   ;;  %vm560_vm4 = vcmask (!%p152_p3), 130048  }
   0xc   : > { %s1077_s29 = smov (!%p152_p3), 20   ;;  %s1078_s30 = smov (!%p152_p3), 24   ;;  %971 = vmatprep.subr.bf16.mxu0 (!%p152_p3), %v970_v27  ;;  %978 = vmatprep.subr.bf16.mxu1 (!%p152_p3), %v970_v27  ;;  %vm569_vm5 = vcmask (!%p152_p3), 162816   ;;  %vm578_vm6 = vcmask (!%p152_p3), 195584   ;;  %vm587_vm7 = vcmask (!%p152_p3), 228352   ;;  %vm596_vm8 = vcmask (!%p152_p3), 261120  }
   0xd   : > { %s1079_s4 = smov (!%p152_p3), 28   ;;  %973 = vmatpush3.bf16.msra.mxu0 (!%p152_p3), %v970_v27  ;;  %981 = vmatpush3.bf16.msra.mxu1 (!%p152_p3), %v970_v27  ;;  %s1080_s22 = smov (!%p152_p3), 32   ;;  %vm617_vm9 = vcmask (!%p152_p3), 293888  }
   0xe   : > { %975 = vmatprep.subr.bf16.mxu0 (!%p152_p3), %v974_v30  ;;  %979 = vmatprep.subr.bf16.mxu1 (!%p152_p3), %v974_v30 }
  0x10   : > { %s1473_s13 = smov (!%p180_p5, %s1059_s13), 1 }
  0x11   : > { %s984_s20 = smul.u32 432, %s1473_s13  ;;  %977 = vmatpush3.bf16.msra.mxu0 %v974_v30  ;;  %982 = vmatpush3.bf16.msra.mxu1 %v974_v30 }
  0x12   : > { %956 = vmatprep.subr.msk.mxu0 %vm642_vm0, %v609_v32  ;;  %980 = vmatprep.subr.msk.mxu1 %vm642_vm0, %v609_v32 }
  0x13   : > { %s184_s23 = scalar_lea.vmem %s1458_s0, %s984_s20 }
  0x14   : > { %s1140_s24 = scalar_lea.vmem %s184_s23, %s870_s19  ;;  %s865_s23 = sshll.u32 %s1055_s12, 2 }
  0x15   : > { %v208_v0 = vld [vmem:[%s1140_s24 + $0x9] sm:$0xff]  ;;  %v207_v1 = vld [vmem:[%s1140_s24 + $0x1] sm:$0xff]  ;;  %v1147_v2 = vld [vmem:[%s1140_s24 + $0x39] sm:$0xff]  ;;  %957 = vmatpush3.msk.msra.mxu0 %vm642_vm0, %v609_v32  ;;  %983 = vmatpush3.msk.msra.mxu1 %vm642_vm0, %v609_v32  ;;  %p188_p6 = scmp.lt.s32.totalorder %s865_s23, 15 }
  0x16   : > { %287 = vrot.lane.b32.xlu1 %v208_v0, %s1073_s25  ;;  %285 = vrot.lane.b32.xlu0 %v207_v1, %s1073_s25  ;;  %v1150_v3 = vld [vmem:[%s1140_s24 + $0x31] sm:$0xff]  ;;  %v215_v5 = vld [vmem:[%s1140_s24 + $0x2] sm:$0xff] }
  0x17   : > { %v1157_v4 = vld [vmem:[%s1140_s24 + $0x32] sm:$0xff]  ;;  %v1164_v6 = vld [vmem:[%s1140_s24 + $0x3a] sm:$0xff]  ;;  %v216_v7 = vld [vmem:[%s1140_s24 + $0xa] sm:$0xff]  ;;  %s1475_s23 = smov (!%p188_p6, %s865_s23), 15 }
  0x18   : > { %v1171_v8 = vld [vmem:[%s1140_s24 + $0x48] sm:$0xff]  ;;  %v1174_v9 = vld [vmem:[%s1140_s24 + $0x18] sm:$0xff]  ;;  %v1181_v10 = vld [vmem:[%s1140_s24 + $0x50] sm:$0xff] }
  0x19   : > { %v1184_v11 = vld [vmem:[%s1140_s24 + $0x20] sm:$0xff]  ;;  %v1191_v12 = vld [vmem:[%s1140_s24 + $0x49] sm:$0xff]  ;;  %v1201_v14 = vld [vmem:[%s1140_s24 + $0x51] sm:$0xff] }
  0x1a   : > { %295 = vrot.lane.b32.xlu1 %v1147_v2, %s1073_s25  ;;  %293 = vrot.lane.b32.xlu0 %v1150_v3, %s1073_s25  ;;  %v881_v13 = vld [vmem:[%s1140_s24 + $0x19] sm:$0xff]  ;;  %v882_v15 = vld [vmem:[%s1140_s24 + $0x21] sm:$0xff] }
  0x1b   : > { %v1208_v16 = vld [vmem:[%s1140_s24 + $0x4a] sm:$0xff]  ;;  %v889_v17 = vld [vmem:[%s1140_s24 + $0x1a] sm:$0xff]  ;;  %v1221_v18 = vld [vmem:[%s1140_s24 + $0x52] sm:$0xff] }
  0x1c   : > { %v890_v19 = vld [vmem:[%s1140_s24 + $0x22] sm:$0xff]  ;;  %v1229_v21 = vld [vmem:[%s1140_s24 + $0x30] sm:$0xff]  ;;  %v1242_v23 = vld [vmem:[%s1140_s24 + $0x38] sm:$0xff] }
  0x1d   : > { %v903_v20 = vld [vmem:[%s1140_s24 + $0x60] sm:$0xff]  ;;  %v904_v22 = vld [vmem:[%s1140_s24 + $0x68] sm:$0xff]  ;;  %v905_v35 = vld [vmem:[%s1140_s24 + $0x78] sm:$0xff] }
  0x1e   : > { %325 = vrot.lane.b32.xlu1 %v1157_v4, %s1074_s26  ;;  %317 = vrot.lane.b32.xlu0 %v215_v5, %s1074_s26  ;;  %v911_v24 = vld [vmem:[%s1140_s24 + $0x61] sm:$0xff]  ;;  %v912_v31 = vld [vmem:[%s1140_s24 + $0x69] sm:$0xff] }
  0x1f   : > { %v919_v33 = vld [vmem:[%s1140_s24 + $0x62] sm:$0xff]  ;;  %v920_v34 = vld [vmem:[%s1140_s24 + $0x6a] sm:$0xff]  ;;  %v913_v37 = vld [vmem:[%s1140_s24 + $0x79] sm:$0xff] }
  0x20   : > { %v906_v36 = vld [vmem:[%s1140_s24 + $0x80] sm:$0xff]  ;;  %v200_v38 = vld [vmem:[%s1140_s24 + $0x8] sm:$0xff] }
  0x21   : > { %v199_v39 = vld [vmem:[%s1140_s24] sm:$0xff] }
  0x22   : > { %327 = vrot.lane.b32.xlu1 %v1164_v6, %s1074_s26  ;;  %319 = vrot.lane.b32.xlu0 %v216_v7, %s1074_s26  ;;  %v914_v40 = vld [vmem:[%s1140_s24 + $0x81] sm:$0xff] }
  0x23   : > { %v921_v45 = vld [vmem:[%s1140_s24 + $0x7a] sm:$0xff]  ;;  %v922_v49 = vld [vmem:[%s1140_s24 + $0x82] sm:$0xff]  ;;  %s866_s24 = sshll.u32 %s1475_s23, 1 }
  0x26   : > { %357 = vrot.lane.b32.xlu1 %v1171_v8, %s1075_s27  ;;  %349 = vrot.lane.b32.xlu0 %v1174_v9, %s1075_s27 }
  0x2a   : > { %359 = vrot.lane.b32.xlu1 %v1181_v10, %s1075_s27  ;;  %351 = vrot.lane.b32.xlu0 %v1184_v11, %s1075_s27 }
  0x2e   : > { %389 = vrot.lane.b32.xlu1 %v1191_v12, %s1076_s28  ;;  %381 = vrot.lane.b32.xlu0 %v881_v13, %s1076_s28 }
  0x32   : > { %297 = vrot.lane.b32.xlu1 %v1191_v12, %s1073_s25  ;;  %289 = vrot.lane.b32.xlu0 %v881_v13, %s1073_s25 }
  0x36   : > { %391 = vrot.lane.b32.xlu1 %v1201_v14, %s1076_s28  ;;  %383 = vrot.lane.b32.xlu0 %v882_v15, %s1076_s28 }
  0x3a   : > { %421 = vrot.lane.b32.xlu1 %v1208_v16, %s1077_s29  ;;  %413 = vrot.lane.b32.xlu0 %v889_v17, %s1077_s29 }
  0x3e   : > { %299 = vrot.lane.b32.xlu1 %v1201_v14, %s1073_s25  ;;  %291 = vrot.lane.b32.xlu0 %v882_v15, %s1073_s25  ;;  %s867_s25 = sshll.u32 %s1473_s13, 5 }
  0x42   : > { %329 = vrot.lane.b32.xlu1 %v1208_v16, %s1074_s26  ;;  %321 = vrot.lane.b32.xlu0 %v889_v17, %s1074_s26 }
  0x46   : > { %423 = vrot.lane.b32.xlu1 %v1221_v18, %s1077_s29  ;;  %415 = vrot.lane.b32.xlu0 %v890_v19, %s1077_s29 }
  0x4a   : > { %453 = vrot.lane.b32.xlu1 %v903_v20, %s1078_s30  ;;  %445 = vrot.lane.b32.xlu0 %v1229_v21, %s1078_s30 }
  0x4e   : > { %331 = vrot.lane.b32.xlu1 %v1221_v18, %s1074_s26  ;;  %323 = vrot.lane.b32.xlu0 %v890_v19, %s1074_s26  ;;  %s192_s26 = sadd.s32 %s867_s25, %s866_s24 }
  0x52   : > { %361 = vrot.lane.b32.xlu1 %v903_v20, %s1075_s27  ;;  %353 = vrot.lane.b32.xlu0 %v1229_v21, %s1075_s27 }
  0x56   : > { %455 = vrot.lane.b32.xlu1 %v904_v22, %s1078_s30  ;;  %447 = vrot.lane.b32.xlu0 %v1242_v23, %s1078_s30 }
  0x5a   : > { %485 = vrot.lane.b32.xlu1 %v911_v24, %s1079_s4  ;;  %477 = vrot.lane.b32.xlu0 %v1150_v3, %s1079_s4 }
  0x5e   : > { %363 = vrot.lane.b32.xlu1 %v904_v22, %s1075_s27  ;;  %355 = vrot.lane.b32.xlu0 %v1242_v23, %s1075_s27  ;;  %s868_s27 = sshll.u32 %s192_s26, 3 }
  0x5f   : > { %s194_s5 = scalar_lea.vmem %s1461_s3, %s868_s27 }
  0x62   : > { %393 = vrot.lane.b32.xlu1 %v911_v24, %s1076_s28  ;;  %385 = vrot.lane.b32.xlu0 %v1150_v3, %s1076_s28 }
  0x66   : > { %487 = vrot.lane.b32.xlu1 %v912_v31, %s1079_s4  ;;  %479 = vrot.lane.b32.xlu0 %v1147_v2, %s1079_s4 }
  0x6a   : > { %517 = vrot.lane.b32.xlu1 %v919_v33, %s1080_s22  ;;  %509 = vrot.lane.b32.xlu0 %v1157_v4, %s1080_s22 }
  0x6e   : > { %395 = vrot.lane.b32.xlu1 %v912_v31, %s1076_s28  ;;  %387 = vrot.lane.b32.xlu0 %v1147_v2, %s1076_s28 }
  0x72   : > { %425 = vrot.lane.b32.xlu1 %v919_v33, %s1077_s29  ;;  %417 = vrot.lane.b32.xlu0 %v1157_v4, %s1077_s29 }
  0x76   : > { %519 = vrot.lane.b32.xlu1 %v920_v34, %s1080_s22  ;;  %511 = vrot.lane.b32.xlu0 %v1164_v6, %s1080_s22 }
  0x7a   : > { %427 = vrot.lane.b32.xlu1 %v920_v34, %s1077_s29  ;;  %419 = vrot.lane.b32.xlu0 %v1164_v6, %s1077_s29 }
  0x7e   : > { %457 = vrot.lane.b32.xlu1 %v905_v35, %s1078_s30  ;;  %449 = vrot.lane.b32.xlu0 %v1171_v8, %s1078_s30 }
  0x82   : > { %459 = vrot.lane.b32.xlu1 %v906_v36, %s1078_s30  ;;  %451 = vrot.lane.b32.xlu0 %v1181_v10, %s1078_s30 }
  0x86   : > { %489 = vrot.lane.b32.xlu1 %v913_v37, %s1079_s4  ;;  %481 = vrot.lane.b32.xlu0 %v1191_v12, %s1079_s4 }
  0x88   : > { %v288_v41 = vpop.permute.xlu1 %287  ;;  %v286_v42 = vpop.permute.xlu0 %285 }
  0x89   : > { %v535_v43 = vsel %vm533_vm1, %v200_v38, %v288_v41  ;;  %v534_v44 = vsel %vm533_vm1, %v199_v39, %v286_v42 }
  0x8a   : > { %491 = vrot.lane.b32.xlu1 %v914_v40, %s1079_s4  ;;  %483 = vrot.lane.b32.xlu0 %v1201_v14, %s1079_s4 }
  0x8c   : > { %v296_v46 = vpop.permute.xlu1 %295  ;;  %v294_v47 = vpop.permute.xlu0 %293 }
  0x8d   : > { %v539_v48 = vsel %vm533_vm1, %v1242_v23, %v296_v46  ;;  %v538_v50 = vsel %vm533_vm1, %v1229_v21, %v294_v47 }
  0x8e   : > { %521 = vrot.lane.b32.xlu1 %v921_v45, %s1080_s22  ;;  %513 = vrot.lane.b32.xlu0 %v1208_v16, %s1080_s22 }
  0x90   : > { %v326_v51 = vpop.permute.xlu1 %325  ;;  %v318_v52 = vpop.permute.xlu0 %317 }
  0x91   : > { %v547_v53 = vsel %vm542_vm2, %v538_v50, %v326_v51  ;;  %v543_v54 = vsel %vm542_vm2, %v534_v44, %v318_v52 }
  0x92   : > { %523 = vrot.lane.b32.xlu1 %v922_v49, %s1080_s22  ;;  %515 = vrot.lane.b32.xlu0 %v1221_v18, %s1080_s22 }
  0x94   : > { %v328_v55 = vpop.permute.xlu1 %327  ;;  %v320_v56 = vpop.permute.xlu0 %319 }
  0x95   : > { %v548_v57 = vsel %vm542_vm2, %v539_v48, %v328_v55  ;;  %v544_v58 = vsel %vm542_vm2, %v535_v43, %v320_v56 }
  0x98   : > { %v358_v59 = vpop.permute.xlu1 %357  ;;  %v350_v60 = vpop.permute.xlu0 %349 }
  0x99   : > { %v556_v35 = vsel %vm551_vm3, %v547_v53, %v358_v59  ;;  %v552_v36 = vsel %vm551_vm3, %v543_v54, %v350_v60 }
  0x9c   : > { %v360_v61 = vpop.permute.xlu1 %359  ;;  %v352_v62 = vpop.permute.xlu0 %351 }
  0x9d   : > { %v1330_v63 = vsel %vm551_vm3, %v548_v57, %v360_v61  ;;  %v1333_v0 = vsel %vm551_vm3, %v544_v58, %v352_v62 }
  0xa0   : > { %v390_v1 = vpop.permute.xlu1 %389  ;;  %v382_v2 = vpop.permute.xlu0 %381 }
  0xa1   : > { %v565_v39 = vsel %vm560_vm4, %v556_v35, %v390_v1  ;;  %v561_v40 = vsel %vm560_vm4, %v552_v36, %v382_v2 }
  0xa4   : > { %v298_v3 = vpop.permute.xlu1 %297  ;;  %v290_v4 = vpop.permute.xlu0 %289 }
  0xa5   : > { %v540_v15 = vsel %vm533_vm1, %v1171_v8, %v298_v3  ;;  %v536_v16 = vsel %vm533_vm1, %v1174_v9, %v290_v4 }
  0xa8   : > { %v392_v5 = vpop.permute.xlu1 %391  ;;  %v384_v6 = vpop.permute.xlu0 %383 }
  0xa9   : > { %v566_v55 = vsel %vm560_vm4, %v1330_v63, %v392_v5  ;;  %v562_v56 = vsel %vm560_vm4, %v1333_v0, %v384_v6 }
  0xac   : > { %v422_v7 = vpop.permute.xlu1 %421  ;;  %v414_v12 = vpop.permute.xlu0 %413 }
  0xad   : > { %v574_v41 = vsel %vm569_vm5, %v565_v39, %v422_v7  ;;  %v570_v42 = vsel %vm569_vm5, %v561_v40, %v414_v12 }
  0xb0   : > { %v1335_v13 = vpop.permute.xlu1 %299  ;;  %v1337_v14 = vpop.permute.xlu0 %291 }
  0xb4   : > { %v330_v17 = vpop.permute.xlu1 %329  ;;  %v322_v18 = vpop.permute.xlu0 %321 }
  0xb5   : > { %v1344_v19 = vsel %vm542_vm2, %v540_v15, %v330_v17  ;;  %v1347_v20 = vsel %vm542_vm2, %v536_v16, %v322_v18 }
  0xb8   : > { %v424_v21 = vpop.permute.xlu1 %423  ;;  %v416_v22 = vpop.permute.xlu0 %415 }
  0xb9   : > { %v575_v57 = vsel %vm569_vm5, %v566_v55, %v424_v21  ;;  %v571_v58 = vsel %vm569_vm5, %v562_v56, %v416_v22 }
  0xbc   : > { %v454_v23 = vpop.permute.xlu1 %453  ;;  %v446_v24 = vpop.permute.xlu0 %445 }
  0xbd   : > { %v583_v43 = vsel %vm578_vm6, %v574_v41, %v454_v23  ;;  %v579_v44 = vsel %vm578_vm6, %v570_v42, %v446_v24 }
  0xc0   : > { %v1349_v25 = vpop.permute.xlu1 %331  ;;  %v1351_v26 = vpop.permute.xlu0 %323 }
  0xc4   : > { %v362_v8 = vpop.permute.xlu1 %361  ;;  %v354_v27 = vpop.permute.xlu0 %353 }
  0xc5   : > { %v558_v17 = vsel %vm551_vm3, %v1344_v19, %v362_v8  ;;  %v554_v18 = vsel %vm551_vm3, %v1347_v20, %v354_v27 }
  0xc8   : > { %v456_v28 = vpop.permute.xlu1 %455  ;;  %v448_v9 = vpop.permute.xlu0 %447 }
  0xc9   : > { %v584_v59 = vsel %vm578_vm6, %v575_v57, %v456_v28  ;;  %v580_v60 = vsel %vm578_vm6, %v571_v58, %v448_v9  ;;  %v541_v28 = vsel %vm533_vm1, %v1181_v10, %v1335_v13  ;;  %v537_v9 = vsel %vm533_vm1, %v1184_v11, %v1337_v14 }
  0xca   : > { %v550_v20 = vsel %vm542_vm2, %v541_v28, %v1349_v25  ;;  %v546_v8 = vsel %vm542_vm2, %v537_v9, %v1351_v26 }
  0xcc   : > { %v486_v29 = vpop.permute.xlu1 %485  ;;  %v478_v30 = vpop.permute.xlu0 %477 }
  0xcd   : > { %v592_v45 = vsel %vm587_vm7, %v583_v43, %v486_v29  ;;  %v588_v46 = vsel %vm587_vm7, %v579_v44, %v478_v30 }
  0xd0   : > { %v1353_v31 = vpop.permute.xlu1 %363  ;;  %v1355_v32 = vpop.permute.xlu0 %355 }
  0xd1   : > { %v559_v10 = vsel %vm551_vm3, %v550_v20, %v1353_v31  ;;  %v555_v11 = vsel %vm551_vm3, %v546_v8, %v1355_v32 }
  0xd4   : > { %v394_v33 = vpop.permute.xlu1 %393  ;;  %v386_v34 = vpop.permute.xlu0 %385 }
  0xd5   : > { %v567_v23 = vsel %vm560_vm4, %v558_v17, %v394_v33  ;;  %v563_v24 = vsel %vm560_vm4, %v554_v18, %v386_v34 }
  0xd8   : > { %v488_v37 = vpop.permute.xlu1 %487  ;;  %v480_v38 = vpop.permute.xlu0 %479 }
  0xd9   : > { %v593_v61 = vsel %vm587_vm7, %v584_v59, %v488_v37  ;;  %v589_v62 = vsel %vm587_vm7, %v580_v60, %v480_v38 }
  0xdc   : > { %v518_v47 = vpop.permute.xlu1 %517  ;;  %v510_v48 = vpop.permute.xlu0 %509 }
  0xdd   : > { %v597_v49 = vsel %vm596_vm8, %v588_v46, %v510_v48  ;;  %v601_v50 = vsel %vm596_vm8, %v592_v45, %v518_v47  ;;  %v923_v45 = vld [vmem:[%s1460_s2] ss:$0 sm:$0xff] }
  0xde   : > { %958 = vmatprep.mubr.msk.f32.mxu0 %vm617_vm9, %v597_v49  ;;  %964 = vmatprep.mubr.msk.f32.mxu1 %vm617_vm9, %v601_v50 }
  0xe0   : > { %v396_v51 = vpop.permute.xlu1 %395  ;;  %v388_v52 = vpop.permute.xlu0 %387 }
  0xe1   : > { %v568_v25 = vsel %vm560_vm4, %v559_v10, %v396_v51  ;;  %v564_v26 = vsel %vm560_vm4, %v555_v11, %v388_v52 }
  0xe4   : > { %v426_v53 = vpop.permute.xlu1 %425  ;;  %v418_v54 = vpop.permute.xlu0 %417 }
  0xe5   : > { %v576_v29 = vsel %vm569_vm5, %v567_v23, %v426_v53  ;;  %v572_v19 = vsel %vm569_vm5, %v563_v24, %v418_v54 }
  0xe8   : > { %v520_v1 = vpop.permute.xlu1 %519  ;;  %v512_v2 = vpop.permute.xlu0 %511 }
  0xe9   : > { %v602_v3 = vsel %vm596_vm8, %v593_v61, %v520_v1  ;;  %v598_v63 = vsel %vm596_vm8, %v589_v62, %v512_v2 }
  0xea   : > { %959 = vmatmul.mubr.msk.f32.vlgmr.msra.gmra.mrb[0].mxu0 %vm617_vm9, %v598_v63  ;;  %965 = vmatmul.mubr.msk.f32.vlgmr.msra.gmra.mrb[0].mxu1 %vm617_vm9, %v602_v3 }
  0xec   : > { %v428_v0 = vpop.permute.xlu1 %427  ;;  %v420_v4 = vpop.permute.xlu0 %419 }
  0xed   : > { %v577_v31 = vsel %vm569_vm5, %v568_v25, %v428_v0  ;;  %v573_v37 = vsel %vm569_vm5, %v564_v26, %v420_v4 }
  0xf0   : > { %v458_v5 = vpop.permute.xlu1 %457  ;;  %v450_v6 = vpop.permute.xlu0 %449 }
  0xf1   : > { %v585_v27 = vsel %vm578_vm6, %v576_v29, %v458_v5  ;;  %v581_v30 = vsel %vm578_vm6, %v572_v19, %v450_v6 }
  0xf4   : > { %v460_v7 = vpop.permute.xlu1 %459  ;;  %v452_v12 = vpop.permute.xlu0 %451 }
  0xf5   : > { %v586_v32 = vsel %vm578_vm6, %v577_v31, %v460_v7  ;;  %v582_v38 = vsel %vm578_vm6, %v573_v37, %v452_v12 }
  0xf8   : > { %v490_v15 = vpop.permute.xlu1 %489  ;;  %v482_v16 = vpop.permute.xlu0 %481 }
  0xf9   : > { %v594_v13 = vsel %vm587_vm7, %v585_v27, %v490_v15  ;;  %v590_v14 = vsel %vm587_vm7, %v581_v30, %v482_v16 }
  0xfc   : > { %v492_v21 = vpop.permute.xlu1 %491  ;;  %v484_v22 = vpop.permute.xlu0 %483 }
  0xfd   : > { %v595_v39 = vsel %vm587_vm7, %v586_v32, %v492_v21  ;;  %v591_v40 = vsel %vm587_vm7, %v582_v38, %v484_v22 }
 0x100   : > { %v522_v33 = vpop.permute.xlu1 %521  ;;  %v514_v34 = vpop.permute.xlu0 %513 }
 0x101   : > { %v603_v35 = vsel %vm596_vm8, %v594_v13, %v522_v33  ;;  %v599_v36 = vsel %vm596_vm8, %v590_v14, %v514_v34 }
 0x102   : > { %961 = vmatprep.mubr.msk.f32.mxu0 %vm617_vm9, %v599_v36  ;;  %967 = vmatprep.mubr.msk.f32.mxu1 %vm617_vm9, %v603_v35 }
 0x104   : > { %v524_v41 = vpop.permute.xlu1 %523  ;;  %v516_v42 = vpop.permute.xlu0 %515 }
 0x105   : > { %v604_v43 = vsel %vm596_vm8, %v595_v39, %v524_v41  ;;  %v600_v44 = vsel %vm596_vm8, %v591_v40, %v516_v42 }
 0x106   : > { %962 = vmatmul.mubr.msk.f32.gmra.mrb[2].mxu0 %vm617_vm9, %v600_v44  ;;  %968 = vmatmul.mubr.msk.f32.gmra.mrb[2].mxu1 %vm617_vm9, %v604_v43 }
 0x1bd   : > { %v960_v46 = vpop.f32.mrb[0].mxu0  ;;  %v966_v47 = vpop.f32.mrb[0].mxu1 }
 0x1be   : > { %v718_v48 = vadd.f32 %v960_v46, %v923_v45  ;;  %v738_v49 = vadd.f32 %v966_v47, %v923_v45  ;;  %v712_v50 = vpop.f32.mrb[1].mxu0  ;;  %v732_v51 = vpop.f32.mrb[1].mxu1 }
 0x1bf   : > { %v713_v52 = vadd.f32 %v923_v45, %v712_v50  ;;  %v733_v53 = vadd.f32 %v923_v45, %v732_v51 }
 0x1c0   : > { %752 = vst.msk [vmem:[%s194_s5 + $0x8] sm:$0xff] %vm542_vm2, %v718_v48  ;;  %756 = vst.msk [vmem:[%s194_s5 + $0x28] sm:$0xff] %vm542_vm2, %v738_v49 }
 0x1c1   : > { %751 = vst.msk [vmem:[%s194_s5] sm:$0xff] %vm542_vm2, %v713_v52  ;;  %755 = vst.msk [vmem:[%s194_s5 + $0x20] sm:$0xff] %vm542_vm2, %v733_v53 }
 0x1d9   : > { %v963_v54 = vpop.f32.mrb[2].mxu0  ;;  %v969_v55 = vpop.f32.mrb[2].mxu1 }
 0x1da   : > { %v728_v56 = vadd.f32 %v963_v54, %v923_v45  ;;  %v748_v57 = vadd.f32 %v969_v55, %v923_v45  ;;  %v722_v58 = vpop.f32.mrb[3].mxu0  ;;  %v742_v59 = vpop.f32.mrb[3].mxu1 }
 0x1db   : > { %v723_v60 = vadd.f32 %v923_v45, %v722_v58  ;;  %v743_v61 = vadd.f32 %v923_v45, %v742_v59 }
 0x1dc   : > { %754 = vst.msk [vmem:[%s194_s5 + $0x18] sm:$0xff] %vm542_vm2, %v728_v56  ;;  %758 = vst.msk [vmem:[%s194_s5 + $0x38] sm:$0xff] %vm542_vm2, %v748_v57 }
 0x1dd   : > { %753 = vst.msk [vmem:[%s194_s5 + $0x10] sm:$0xff] %vm542_vm2, %v723_v60  ;;  %757 = vst.msk [vmem:[%s194_s5 + $0x30] sm:$0xff] %vm542_vm2, %v743_v61 }
 0x1de PF: > { %s13_s16 = sadd.s32 1, %s1071_s16   ;;  %s1462_s12 = smov %s1063_s14 }
 0x1df   : > { %p10_p7 = scmp.ge.s32.totalorder %s13_s16, 10   ;;  %s1463_s13 = smov %s1067_s15 }
 0x1e0   : > { %s1464_s14 = smov %s1467_s17  ;;  %s1465_s15 = smov %s1471_s18 }
 0x1e1   :  { %12 = sbr.rel (!%p10_p7) target bundleno = 3 (0x3), region = 65 }

</bundles_post_ra>
